<compile_context>
chip_gen: v7x
topology: tpu7x:2x2x1
jax: 0.10.0
libtpu: 0.0.40
codegen_flags: <defaults>
</compile_context>

<pallas_src>
import functools

import jax
import jax.numpy as jnp
from jax.experimental import pallas as pl
from jax.experimental.pallas import tpu as pltpu

LN_EPS = 1e-5           # nn.LayerNorm default
_FFN_CHUNK = 2048       # max hidden-dim chunk width (multiple of 128)


def _layernorm(x, gamma, beta):
    mu = jnp.mean(x, axis=-1, keepdims=True)
    var = jnp.mean((x - mu) ** 2, axis=-1, keepdims=True)
    return (x - mu) * jax.lax.rsqrt(var + LN_EPS) * gamma + beta


def transformer_block_kernel(num_heads, seq_len, compute_dtype, ffn_chunk,
                             x_ref, ln1g_ref, ln1b_ref,
                             wq_ref, bq_ref, wk_ref, bk_ref, wv_ref, bv_ref,
                             wo_ref, bo_ref, ln2g_ref, ln2b_ref,
                             w1_ref, b1_ref, w2_ref, b2_ref,
                             o_ref):
    x = x_ref[...]                           # (R, E) f32 rows, R = block_b * T
    R, E = x.shape
    H, T = num_heads, seq_len
    hs = E // H
    nb = R // T                              # sequences in this row block

    def dense(a, w, b):                      # a: (rows, in) in compute_dtype
        return jnp.dot(a, w, preferred_element_type=jnp.float32) + b

    # ---------------- x + MHA(LN1(x)) ----------------
    h1 = _layernorm(x, ln1g_ref[...], ln1b_ref[...]).astype(compute_dtype)
    # Attention scale (E**-0.5, as in the PyTorch module) is folded into wq/bq
    # in the wrapper, so q is already scaled here.
    q = dense(h1, wq_ref[...], bq_ref[...])
    k = dense(h1, wk_ref[...], bk_ref[...])
    v = dense(h1, wv_ref[...], bv_ref[...])

    # Head-major layout via one reshape + one swapaxes (single relayout), then
    # fold (sequence, head) into one batch axis for a single batched einsum.
    def to_heads(a):                         # (R, E) -> (nb*H, T, hs)
        a = jnp.swapaxes(a.reshape(nb, T, H, hs), 1, 2)
        return a.reshape(nb * H, T, hs).astype(compute_dtype)

    qh, kh, vh = to_heads(q), to_heads(k), to_heads(v)

    wei = jnp.einsum("ntd,nsd->nts", qh, kh,
                     preferred_element_type=jnp.float32)   # (nb*H, T, T) f32
    row = jax.lax.broadcasted_iota(jnp.int32, (T, T), 0)
    col = jax.lax.broadcasted_iota(jnp.int32, (T, T), 1)
    causal = (row >= col)[None]                              # (1, T, T)
    wei = jnp.where(causal, wei, -1e30)      # finite mask value: NaN-robust
    wei = wei - jnp.max(wei, axis=-1, keepdims=True)
    p = jnp.exp(wei)
    p = p * pl.reciprocal(jnp.sum(p, axis=-1, keepdims=True), approx=True)
    # attention dropout: identity in eval mode
    oh = jnp.einsum("nts,nsd->ntd", p.astype(compute_dtype), vh,
                    preferred_element_type=jnp.float32)      # (nb*H, T, hs)

    # Lane-dense merge back to (R, E); feeds the wo dot directly (no scratch).
    attn_in = jnp.swapaxes(oh.reshape(nb, H, T, hs), 1, 2)
    attn_in = attn_in.reshape(R, E).astype(compute_dtype)
    attn = dense(attn_in, wo_ref[...], bo_ref[...])
    # proj dropout: identity in eval mode
    x1 = x + attn

    # ---------------- x + FFN(LN2(x)) ----------------
    h2 = _layernorm(x1, ln2g_ref[...], ln2b_ref[...]).astype(compute_dtype)
    hidden = w1_ref.shape[1]                 # 4E
    ff = jnp.zeros((R, E), jnp.float32)
    # Static chunk loop over the hidden dim bounds the (R, 4E) intermediate
    # (important for v7x's 64 MiB VMEM at large E); one chunk for small E.
    for j0 in range(0, hidden, ffn_chunk):
        j1 = min(j0 + ffn_chunk, hidden)
        hid = jnp.maximum(dense(h2, w1_ref[:, j0:j1], b1_ref[:, j0:j1]), 0.0)
        ff = ff + jnp.dot(hid.astype(compute_dtype), w2_ref[j0:j1, :],
                          preferred_element_type=jnp.float32)
    ff = ff + b2_ref[...]
    # ffwd dropout: identity in eval mode
    o_ref[...] = (x1 + ff).astype(o_ref.dtype)


def _vmem_limit_bytes(rows, E, T, H, block_b, args, compute_dtype, x_dtype):
    """Shape-derived scoped-VMEM limit with headroom (clamped to [32, 110] MiB)."""
    cdt = jnp.dtype(compute_dtype).itemsize
    f32 = 4
    hidden = 4 * E
    ffn_chunk = min(hidden, _FFN_CHUNK)
    io = 2 * 2 * rows * E * jnp.dtype(x_dtype).itemsize        # dbl-buffered in/out
    weights = sum(int(a.size) * a.dtype.itemsize for a in args)  # resident, single-buf
    qkv = 3 * rows * E * (f32 + cdt)                            # projections + head copies
    scores = 2 * block_b * H * T * T * f32                      # wei + p
    ffn = rows * ffn_chunk * (f32 + cdt) + rows * E * f32
    misc = 4 * rows * E * f32
    est = io + weights + qkv + scores + ffn + misc
    return int(min(max(int(est * 1.5) + (4 << 20), 32 << 20), 110 << 20))


def transformer_block(x, params, num_heads, *,
                      compute_dtype=jnp.bfloat16, target_rows=256):
    B, T, E = x.shape
    assert E % num_heads == 0
    scale = E ** (-0.5)                      # PyTorch module scales by C**-0.5, C = n_emb

    # Whole sequences per row block, aiming for ~target_rows rows per grid step
    # (raise to 512 on v6e/v5e when T allows; VMEM there is 128 MiB).  Prefer a
    # choice that gives an even number of grid steps so both v7x TCs get work.
    max_b = max(1, target_rows // T)
    divisors = [d for d in range(1, B + 1) if B % d == 0 and d <= max_b]
    even = [d for d in divisors if (B // d) % 2 == 0]
    block_b = max(even) if even else max(divisors)
    rows = block_b * T
    assert rows % 8 == 0 or rows == B * T, "row block must be sublane aligned"

    x2d = x.reshape(B * T, E)                # flatten (B, T) -> rows (free in XLA)

    # Fold the attention scale into the query projection (free constant fold).
    prepped = dict(params)
    prepped["wq"] = params["wq"] * scale
    prepped["bq"] = params["bq"] * scale

    weight_names = ("wq", "wk", "wv", "wo", "w1", "w2")
    names = ["ln1g", "ln1b", "wq", "bq", "wk", "bk", "wv", "bv",
             "wo", "bo", "ln2g", "ln2b", "w1", "b1", "w2", "b2"]
    # Weights cast once here (bf16 on v6e/v7x): halves their VMEM/DMA footprint.
    args = [prepped[n].astype(compute_dtype) if n in weight_names else prepped[n]
            for n in names]

    # Whole-array, single-buffered VMEM residence for weights/biases/LN params
    # (constant across the grid -> no double-buffering waste).
    resident = pl.BlockSpec(memory_space=pltpu.MemorySpace.VMEM)

    grid = (B * T // rows,)
    in_specs = [pl.BlockSpec((rows, E), lambda i: (i, 0))] + [resident] * len(args)
    out_specs = pl.BlockSpec((rows, E), lambda i: (i, 0))

    hidden = 4 * E
    ffn_chunk = min(hidden, _FFN_CHUNK)
    vmem_limit = _vmem_limit_bytes(rows, E, T, num_heads, block_b, args,
                                   compute_dtype, x.dtype)

    # TODO(synk): pass input_output_aliases={0: 0} when the caller donates x2d
    # to save the output HBM allocation/write (mem-bound win on v5e).
    out2d = pl.pallas_call(
        functools.partial(transformer_block_kernel, num_heads, T,
                          compute_dtype, ffn_chunk),
        out_shape=jax.ShapeDtypeStruct((B * T, E), x.dtype),
        grid_spec=pltpu.PrefetchScalarGridSpec(
            num_scalar_prefetch=0,
            grid=grid,
            in_specs=in_specs,
            out_specs=out_specs,
        ),
        compiler_params=pltpu.CompilerParams(
            dimension_semantics=("parallel",),   # row blocks shard across TCs (v7x)
            vmem_limit_bytes=vmem_limit,
        ),
    )(x2d, *args)
    return out2d.reshape(B, T, E)


def reference(x, params, num_heads):
    """Pure-JAX reference mirroring the PyTorch module (eval mode), f32."""
    B, T, E = x.shape
    hs = E // num_heads
    h1 = _layernorm(x, params["ln1g"], params["ln1b"])
    q = h1 @ params["wq"] + params["bq"]
    k = h1 @ params["wk"] + params["bk"]
    v = h1 @ params["wv"] + params["bv"]
    qh = q.reshape(B, T, num_heads, hs).transpose(0, 2, 1, 3)
    kh = k.reshape(B, T, num_heads, hs).transpose(0, 2, 1, 3)
    vh = v.reshape(B, T, num_heads, hs).transpose(0, 2, 1, 3)
    mask = jnp.tril(jnp.ones((T, T), bool))
    wei = jnp.einsum("bhtd,bhsd->bhts", qh, kh) * (E ** -0.5)
    wei = jnp.where(mask, wei, -jnp.inf)
    wei = jax.nn.softmax(wei, axis=-1)
    attn = jnp.einsum("bhts,bhsd->bhtd", wei, vh)
    attn = attn.transpose(0, 2, 1, 3).reshape(B, T, E) @ params["wo"] + params["bo"]
    x1 = x + attn
    h2 = _layernorm(x1, params["ln2g"], params["ln2b"])
    ff = jnp.maximum(h2 @ params["w1"] + params["b1"], 0.0) @ params["w2"] + params["b2"]
    return x1 + ff


if __name__ == "__main__":
    num_heads = 4
    block_size = 8     # T
    n_emb = 32         # E
    B, T, E = 2, block_size, n_emb

    key = jax.random.PRNGKey(0)
    keys = jax.random.split(key, 16)

    def rnd(k, shape, scale=0.1):
        return (scale * jax.random.normal(k, shape)).astype(jnp.float32)

    # nn.Linear weights are (out, in) in PyTorch; here they are created
    # directly in (in, out) layout so the kernel computes x @ W + b.
    params = {
        "ln1g": jnp.ones((1, E), jnp.float32),
        "ln1b": jnp.zeros((1, E), jnp.float32),
        "wq": rnd(keys[0], (E, E)), "bq": rnd(keys[1], (1, E)),
        "wk": rnd(keys[2], (E, E)), "bk": rnd(keys[3], (1, E)),
        "wv": rnd(keys[4], (E, E)), "bv": rnd(keys[5], (1, E)),
        "wo": rnd(keys[6], (E, E)), "bo": rnd(keys[7], (1, E)),
        "ln2g": jnp.ones((1, E), jnp.float32),
        "ln2b": jnp.zeros((1, E), jnp.float32),
        "w1": rnd(keys[8], (E, 4 * E)), "b1": rnd(keys[9], (1, 4 * E)),
        "w2": rnd(keys[10], (4 * E, E)), "b2": rnd(keys[11], (1, E)),
    }
    x = rnd(keys[12], (B, T, E), scale=1.0)

    ref = reference(x, params, num_heads)

    # f32 matmul path: strict parity with the pure-JAX reference.
    out_f32 = jax.block_until_ready(
        transformer_block(x, params, num_heads, compute_dtype=jnp.float32))
    assert out_f32.shape == (B, T, E)
    assert jnp.allclose(out_f32, ref, atol=1e-3, rtol=1e-3), "f32 kernel mismatch"

    # bf16 matmul path (v6e/v7x MXU rate, f32 accumulation): looser tolerance.
    out_bf16 = jax.block_until_ready(
        transformer_block(x, params, num_heads, compute_dtype=jnp.bfloat16))
    assert out_bf16.shape == (B, T, E)
    assert jnp.allclose(out_bf16, ref, atol=2e-2, rtol=2e-2), "bf16 kernel mismatch"

    print("KERNEL_OK")
</pallas_src>

<mosaic_0001>
module attributes {stable_mosaic.version = 11 : i64} {
  func.func @transformer_block_kernel(%arg0: i32, %arg1: memref<8x32xf32, #tpu.memory_space<vmem>>, %arg2: memref<1x32xf32, #tpu.memory_space<vmem>>, %arg3: memref<1x32xf32, #tpu.memory_space<vmem>>, %arg4: memref<32x32xf32, #tpu.memory_space<vmem>>, %arg5: memref<1x32xf32, #tpu.memory_space<vmem>>, %arg6: memref<32x32xf32, #tpu.memory_space<vmem>>, %arg7: memref<1x32xf32, #tpu.memory_space<vmem>>, %arg8: memref<32x32xf32, #tpu.memory_space<vmem>>, %arg9: memref<1x32xf32, #tpu.memory_space<vmem>>, %arg10: memref<32x32xf32, #tpu.memory_space<vmem>>, %arg11: memref<1x32xf32, #tpu.memory_space<vmem>>, %arg12: memref<1x32xf32, #tpu.memory_space<vmem>>, %arg13: memref<1x32xf32, #tpu.memory_space<vmem>>, %arg14: memref<32x128xf32, #tpu.memory_space<vmem>>, %arg15: memref<1x128xf32, #tpu.memory_space<vmem>>, %arg16: memref<128x32xf32, #tpu.memory_space<vmem>>, %arg17: memref<1x32xf32, #tpu.memory_space<vmem>>, %arg18: memref<8x32xf32, #tpu.memory_space<vmem>>) attributes {dimension_semantics = [#tpu.dimension_semantics<parallel>], iteration_bounds = array<i64: 2>, scalar_prefetch = 0 : i64, scratch_operands = 0 : i64, tpu.core_type = #tpu.core_type<tc>, window_params = [{transform_indices = @transform_0, window_bounds = array<i64: 8, 32>}, {pipeline_mode = #tpu.pipeline_mode<synchronous>, transform_indices = @transform_1, window_bounds = array<i64: 1, 32>}, {pipeline_mode = #tpu.pipeline_mode<synchronous>, transform_indices = @transform_2, window_bounds = array<i64: 1, 32>}, {pipeline_mode = #tpu.pipeline_mode<synchronous>, transform_indices = @transform_3, window_bounds = array<i64: 32, 32>}, {pipeline_mode = #tpu.pipeline_mode<synchronous>, transform_indices = @transform_4, window_bounds = array<i64: 1, 32>}, {pipeline_mode = #tpu.pipeline_mode<synchronous>, transform_indices = @transform_5, window_bounds = array<i64: 32, 32>}, {pipeline_mode = #tpu.pipeline_mode<synchronous>, transform_indices = @transform_6, window_bounds = array<i64: 1, 32>}, {pipeline_mode = #tpu.pipeline_mode<synchronous>, transform_indices = @transform_7, window_bounds = array<i64: 32, 32>}, {pipeline_mode = #tpu.pipeline_mode<synchronous>, transform_indices = @transform_8, window_bounds = array<i64: 1, 32>}, {pipeline_mode = #tpu.pipeline_mode<synchronous>, transform_indices = @transform_9, window_bounds = array<i64: 32, 32>}, {pipeline_mode = #tpu.pipeline_mode<synchronous>, transform_indices = @transform_10, window_bounds = array<i64: 1, 32>}, {pipeline_mode = #tpu.pipeline_mode<synchronous>, transform_indices = @transform_11, window_bounds = array<i64: 1, 32>}, {pipeline_mode = #tpu.pipeline_mode<synchronous>, transform_indices = @transform_12, window_bounds = array<i64: 1, 32>}, {pipeline_mode = #tpu.pipeline_mode<synchronous>, transform_indices = @transform_13, window_bounds = array<i64: 32, 128>}, {pipeline_mode = #tpu.pipeline_mode<synchronous>, transform_indices = @transform_14, window_bounds = array<i64: 1, 128>}, {pipeline_mode = #tpu.pipeline_mode<synchronous>, transform_indices = @transform_15, window_bounds = array<i64: 128, 32>}, {pipeline_mode = #tpu.pipeline_mode<synchronous>, transform_indices = @transform_16, window_bounds = array<i64: 1, 32>}, {transform_indices = @transform_17, window_bounds = array<i64: 8, 32>}]} {
    %c0 = arith.constant 0 : index
    %c0_0 = arith.constant 0 : index
    %0 = vector.load %arg1[%c0, %c0_0] : memref<8x32xf32, #tpu.memory_space<vmem>>, vector<8x32xf32>
    %c0_1 = arith.constant 0 : index
    %c0_2 = arith.constant 0 : index
    %1 = vector.load %arg2[%c0_1, %c0_2] : memref<1x32xf32, #tpu.memory_space<vmem>>, vector<1x32xf32>
    %c0_3 = arith.constant 0 : index
    %c0_4 = arith.constant 0 : index
    %2 = vector.load %arg3[%c0_3, %c0_4] : memref<1x32xf32, #tpu.memory_space<vmem>>, vector<1x32xf32>
    %cst = arith.constant dense<0.000000e+00> : vector<8xf32>
    %3 = vector.multi_reduction <add>, %0, %cst [1] : vector<8x32xf32> to vector<8xf32>
    %4 = vector.shape_cast %3 : vector<8xf32> to vector<8x1xf32>
    %cst_5 = arith.constant 3.200000e+01 : f32
    %5 = vector.broadcast %cst_5 : f32 to vector<8x1xf32>
    %6 = arith.divf %4, %5 : vector<8x1xf32>
    %7 = vector.broadcast %6 : vector<8x1xf32> to vector<8x32xf32>
    %8 = arith.subf %0, %7 : vector<8x32xf32>
    %9 = arith.mulf %8, %8 : vector<8x32xf32>
    %cst_6 = arith.constant dense<0.000000e+00> : vector<8xf32>
    %10 = vector.multi_reduction <add>, %9, %cst_6 [1] : vector<8x32xf32> to vector<8xf32>
    %11 = vector.shape_cast %10 : vector<8xf32> to vector<8x1xf32>
    %cst_7 = arith.constant 3.200000e+01 : f32
    %12 = vector.broadcast %cst_7 : f32 to vector<8x1xf32>
    %13 = arith.divf %11, %12 : vector<8x1xf32>
    %14 = vector.broadcast %6 : vector<8x1xf32> to vector<8x32xf32>
    %15 = arith.subf %0, %14 : vector<8x32xf32>
    %cst_8 = arith.constant 9.99999974E-6 : f32
    %16 = vector.broadcast %cst_8 : f32 to vector<8x1xf32>
    %17 = arith.addf %13, %16 : vector<8x1xf32>
    %18 = math.rsqrt %17 : vector<8x1xf32>
    %19 = vector.broadcast %18 : vector<8x1xf32> to vector<8x32xf32>
    %20 = arith.mulf %15, %19 : vector<8x32xf32>
    %21 = vector.broadcast %1 : vector<1x32xf32> to vector<8x32xf32>
    %22 = arith.mulf %20, %21 : vector<8x32xf32>
    %23 = vector.broadcast %2 : vector<1x32xf32> to vector<8x32xf32>
    %24 = arith.addf %22, %23 : vector<8x32xf32>
    %c0_9 = arith.constant 0 : index
    %c0_10 = arith.constant 0 : index
    %25 = vector.load %arg4[%c0_9, %c0_10] : memref<32x32xf32, #tpu.memory_space<vmem>>, vector<32x32xf32>
    %c0_11 = arith.constant 0 : index
    %c0_12 = arith.constant 0 : index
    %26 = vector.load %arg5[%c0_11, %c0_12] : memref<1x32xf32, #tpu.memory_space<vmem>>, vector<1x32xf32>
    %cst_13 = arith.constant dense<0.000000e+00> : vector<8x32xf32>
    %27 = tpu.matmul %24, %25, %cst_13 {dimension_numbers = #tpu.dot_dimension_numbers<[1], [0], [0], [1], [0, 0, 1, 1], [], []>} : vector<8x32xf32>, vector<32x32xf32>, vector<8x32xf32> -> vector<8x32xf32>
    %28 = vector.broadcast %26 : vector<1x32xf32> to vector<8x32xf32>
    %29 = arith.addf %27, %28 : vector<8x32xf32>
    %c0_14 = arith.constant 0 : index
    %c0_15 = arith.constant 0 : index
    %30 = vector.load %arg6[%c0_14, %c0_15] : memref<32x32xf32, #tpu.memory_space<vmem>>, vector<32x32xf32>
    %c0_16 = arith.constant 0 : index
    %c0_17 = arith.constant 0 : index
    %31 = vector.load %arg7[%c0_16, %c0_17] : memref<1x32xf32, #tpu.memory_space<vmem>>, vector<1x32xf32>
    %cst_18 = arith.constant dense<0.000000e+00> : vector<8x32xf32>
    %32 = tpu.matmul %24, %30, %cst_18 {dimension_numbers = #tpu.dot_dimension_numbers<[1], [0], [0], [1], [0, 0, 1, 1], [], []>} : vector<8x32xf32>, vector<32x32xf32>, vector<8x32xf32> -> vector<8x32xf32>
    %33 = vector.broadcast %31 : vector<1x32xf32> to vector<8x32xf32>
    %34 = arith.addf %32, %33 : vector<8x32xf32>
    %c0_19 = arith.constant 0 : index
    %c0_20 = arith.constant 0 : index
    %35 = vector.load %arg8[%c0_19, %c0_20] : memref<32x32xf32, #tpu.memory_space<vmem>>, vector<32x32xf32>
    %c0_21 = arith.constant 0 : index
    %c0_22 = arith.constant 0 : index
    %36 = vector.load %arg9[%c0_21, %c0_22] : memref<1x32xf32, #tpu.memory_space<vmem>>, vector<1x32xf32>
    %cst_23 = arith.constant dense<0.000000e+00> : vector<8x32xf32>
    %37 = tpu.matmul %24, %35, %cst_23 {dimension_numbers = #tpu.dot_dimension_numbers<[1], [0], [0], [1], [0, 0, 1, 1], [], []>} : vector<8x32xf32>, vector<32x32xf32>, vector<8x32xf32> -> vector<8x32xf32>
    %38 = vector.broadcast %36 : vector<1x32xf32> to vector<8x32xf32>
    %39 = arith.addf %37, %38 : vector<8x32xf32>
    %40 = vector.shape_cast %29 : vector<8x32xf32> to vector<1x8x4x8xf32>
    %41 = tpu.transpose %40, [0, 2, 1, 3] : vector<1x8x4x8xf32> -> vector<1x4x8x8xf32>
    %42 = vector.shape_cast %41 : vector<1x4x8x8xf32> to vector<4x8x8xf32>
    %43 = vector.shape_cast %34 : vector<8x32xf32> to vector<1x8x4x8xf32>
    %44 = tpu.transpose %43, [0, 2, 1, 3] : vector<1x8x4x8xf32> -> vector<1x4x8x8xf32>
    %45 = vector.shape_cast %44 : vector<1x4x8x8xf32> to vector<4x8x8xf32>
    %46 = vector.shape_cast %39 : vector<8x32xf32> to vector<1x8x4x8xf32>
    %47 = tpu.transpose %46, [0, 2, 1, 3] : vector<1x8x4x8xf32> -> vector<1x4x8x8xf32>
    %48 = vector.shape_cast %47 : vector<1x4x8x8xf32> to vector<4x8x8xf32>
    "tpu.trace_start"() <{level = 10 : i32, message = "ntd,nsd->nts"}> : () -> ()
    %cst_24 = arith.constant dense<0.000000e+00> : vector<4x8x8xf32>
    %49 = tpu.matmul %42, %45, %cst_24 {dimension_numbers = #tpu.dot_dimension_numbers<[2], [2], [1], [1], [0, 0, 0, 1, 1, 1], [0], [0]>} : vector<4x8x8xf32>, vector<4x8x8xf32>, vector<4x8x8xf32> -> vector<4x8x8xf32>
    "tpu.trace_stop"() : () -> ()
    %50 = tpu.iota {dimensions = array<i32: 0>} : vector<8x8xi32>
    %51 = tpu.iota {dimensions = array<i32: 1>} : vector<8x8xi32>
    %52 = arith.cmpi sge, %50, %51 : vector<8x8xi32>
    %53 = vector.shape_cast %52 : vector<8x8xi1> to vector<1x8x8xi1>
    %cst_25 = arith.constant -1.000000e+30 : f32
    %54 = vector.shape_cast %53 : vector<1x8x8xi1> to vector<1x8x8xi1>
    %55 = vector.broadcast %54 : vector<1x8x8xi1> to vector<4x8x8xi1>
    %56 = vector.broadcast %cst_25 : f32 to vector<4x8x8xf32>
    %57 = arith.select %55, %49, %56 : vector<4x8x8xi1>, vector<4x8x8xf32>
    %cst_26 = arith.constant dense<0xFF800000> : vector<4x8xf32>
    %58 = vector.multi_reduction <maximumf>, %57, %cst_26 [2] : vector<4x8x8xf32> to vector<4x8xf32>
    %59 = vector.shape_cast %58 : vector<4x8xf32> to vector<4x8x1xf32>
    %60 = vector.broadcast %59 : vector<4x8x1xf32> to vector<4x8x8xf32>
    %61 = arith.subf %57, %60 : vector<4x8x8xf32>
    %62 = math.exp %61 : vector<4x8x8xf32>
    %cst_27 = arith.constant dense<0.000000e+00> : vector<4x8xf32>
    %63 = vector.multi_reduction <add>, %62, %cst_27 [2] : vector<4x8x8xf32> to vector<4x8xf32>
    %64 = vector.shape_cast %63 : vector<4x8xf32> to vector<4x8x1xf32>
    %65 = tpu.reciprocal %64 {approx = true} : vector<4x8x1xf32> -> vector<4x8x1xf32>
    %66 = vector.broadcast %65 : vector<4x8x1xf32> to vector<4x8x8xf32>
    %67 = arith.mulf %62, %66 : vector<4x8x8xf32>
    "tpu.trace_start"() <{level = 10 : i32, message = "nts,nsd->ntd"}> : () -> ()
    %cst_28 = arith.constant dense<0.000000e+00> : vector<4x8x8xf32>
    %68 = tpu.matmul %67, %48, %cst_28 {dimension_numbers = #tpu.dot_dimension_numbers<[2], [1], [1], [2], [0, 0, 0, 1, 1, 2], [0], [0]>} : vector<4x8x8xf32>, vector<4x8x8xf32>, vector<4x8x8xf32> -> vector<4x8x8xf32>
    "tpu.trace_stop"() : () -> ()
    %69 = vector.shape_cast %68 : vector<4x8x8xf32> to vector<1x4x8x8xf32>
    %70 = tpu.transpose %69, [0, 2, 1, 3] : vector<1x4x8x8xf32> -> vector<1x8x4x8xf32>
    %71 = vector.shape_cast %70 : vector<1x8x4x8xf32> to vector<8x32xf32>
    %c0_29 = arith.constant 0 : index
    %c0_30 = arith.constant 0 : index
    %72 = vector.load %arg10[%c0_29, %c0_30] : memref<32x32xf32, #tpu.memory_space<vmem>>, vector<32x32xf32>
    %c0_31 = arith.constant 0 : index
    %c0_32 = arith.constant 0 : index
    %73 = vector.load %arg11[%c0_31, %c0_32] : memref<1x32xf32, #tpu.memory_space<vmem>>, vector<1x32xf32>
    %cst_33 = arith.constant dense<0.000000e+00> : vector<8x32xf32>
    %74 = tpu.matmul %71, %72, %cst_33 {dimension_numbers = #tpu.dot_dimension_numbers<[1], [0], [0], [1], [0, 0, 1, 1], [], []>} : vector<8x32xf32>, vector<32x32xf32>, vector<8x32xf32> -> vector<8x32xf32>
    %75 = vector.broadcast %73 : vector<1x32xf32> to vector<8x32xf32>
    %76 = arith.addf %74, %75 : vector<8x32xf32>
    %77 = arith.addf %0, %76 : vector<8x32xf32>
    %c0_34 = arith.constant 0 : index
    %c0_35 = arith.constant 0 : index
    %78 = vector.load %arg12[%c0_34, %c0_35] : memref<1x32xf32, #tpu.memory_space<vmem>>, vector<1x32xf32>
    %c0_36 = arith.constant 0 : index
    %c0_37 = arith.constant 0 : index
    %79 = vector.load %arg13[%c0_36, %c0_37] : memref<1x32xf32, #tpu.memory_space<vmem>>, vector<1x32xf32>
    %cst_38 = arith.constant dense<0.000000e+00> : vector<8xf32>
    %80 = vector.multi_reduction <add>, %77, %cst_38 [1] : vector<8x32xf32> to vector<8xf32>
    %81 = vector.shape_cast %80 : vector<8xf32> to vector<8x1xf32>
    %cst_39 = arith.constant 3.200000e+01 : f32
    %82 = vector.broadcast %cst_39 : f32 to vector<8x1xf32>
    %83 = arith.divf %81, %82 : vector<8x1xf32>
    %84 = vector.broadcast %83 : vector<8x1xf32> to vector<8x32xf32>
    %85 = arith.subf %77, %84 : vector<8x32xf32>
    %86 = arith.mulf %85, %85 : vector<8x32xf32>
    %cst_40 = arith.constant dense<0.000000e+00> : vector<8xf32>
    %87 = vector.multi_reduction <add>, %86, %cst_40 [1] : vector<8x32xf32> to vector<8xf32>
    %88 = vector.shape_cast %87 : vector<8xf32> to vector<8x1xf32>
    %cst_41 = arith.constant 3.200000e+01 : f32
    %89 = vector.broadcast %cst_41 : f32 to vector<8x1xf32>
    %90 = arith.divf %88, %89 : vector<8x1xf32>
    %91 = vector.broadcast %83 : vector<8x1xf32> to vector<8x32xf32>
    %92 = arith.subf %77, %91 : vector<8x32xf32>
    %cst_42 = arith.constant 9.99999974E-6 : f32
    %93 = vector.broadcast %cst_42 : f32 to vector<8x1xf32>
    %94 = arith.addf %90, %93 : vector<8x1xf32>
    %95 = math.rsqrt %94 : vector<8x1xf32>
    %96 = vector.broadcast %95 : vector<8x1xf32> to vector<8x32xf32>
    %97 = arith.mulf %92, %96 : vector<8x32xf32>
    %98 = vector.broadcast %78 : vector<1x32xf32> to vector<8x32xf32>
    %99 = arith.mulf %97, %98 : vector<8x32xf32>
    %100 = vector.broadcast %79 : vector<1x32xf32> to vector<8x32xf32>
    %101 = arith.addf %99, %100 : vector<8x32xf32>
    %cst_43 = arith.constant 0.000000e+00 : f32
    %102 = vector.broadcast %cst_43 : f32 to vector<8x32xf32>
    %c0_44 = arith.constant 0 : index
    %c0_45 = arith.constant 0 : index
    %103 = vector.load %arg14[%c0_44, %c0_45] : memref<32x128xf32, #tpu.memory_space<vmem>>, vector<32x128xf32>
    %c0_46 = arith.constant 0 : index
    %c0_47 = arith.constant 0 : index
    %104 = vector.load %arg15[%c0_46, %c0_47] : memref<1x128xf32, #tpu.memory_space<vmem>>, vector<1x128xf32>
    %cst_48 = arith.constant dense<0.000000e+00> : vector<8x128xf32>
    %105 = tpu.matmul %101, %103, %cst_48 {dimension_numbers = #tpu.dot_dimension_numbers<[1], [0], [0], [1], [0, 0, 1, 1], [], []>} : vector<8x32xf32>, vector<32x128xf32>, vector<8x128xf32> -> vector<8x128xf32>
    %106 = vector.broadcast %104 : vector<1x128xf32> to vector<8x128xf32>
    %107 = arith.addf %105, %106 : vector<8x128xf32>
    %cst_49 = arith.constant 0.000000e+00 : f32
    %108 = vector.broadcast %cst_49 : f32 to vector<8x128xf32>
    %109 = arith.maximumf %107, %108 : vector<8x128xf32>
    %c0_50 = arith.constant 0 : index
    %c0_51 = arith.constant 0 : index
    %110 = vector.load %arg16[%c0_50, %c0_51] : memref<128x32xf32, #tpu.memory_space<vmem>>, vector<128x32xf32>
    %cst_52 = arith.constant dense<0.000000e+00> : vector<8x32xf32>
    %111 = tpu.matmul %109, %110, %cst_52 {dimension_numbers = #tpu.dot_dimension_numbers<[1], [0], [0], [1], [0, 0, 1, 1], [], []>} : vector<8x128xf32>, vector<128x32xf32>, vector<8x32xf32> -> vector<8x32xf32>
    %112 = arith.addf %102, %111 : vector<8x32xf32>
    %c0_53 = arith.constant 0 : index
    %c0_54 = arith.constant 0 : index
    %113 = vector.load %arg17[%c0_53, %c0_54] : memref<1x32xf32, #tpu.memory_space<vmem>>, vector<1x32xf32>
    %114 = vector.broadcast %113 : vector<1x32xf32> to vector<8x32xf32>
    %115 = arith.addf %112, %114 : vector<8x32xf32>
    %116 = arith.addf %77, %115 : vector<8x32xf32>
    %c0_55 = arith.constant 0 : index
    %c0_56 = arith.constant 0 : index
    %117 = vector.load %arg18[%c0_55, %c0_56] : memref<8x32xf32, #tpu.memory_space<vmem>>, vector<8x32xf32>
    tpu.vector_store %arg18[%c0_55, %c0_56], %116 {strides = array<i32>} : memref<8x32xf32, #tpu.memory_space<vmem>>, vector<8x32xf32>,
    return
  }
  func.func @transform_0(%arg0: i32) -> (i32, i32) {
    %c0_i32 = arith.constant 0 : i32
    %c0_i32_0 = arith.constant 0 : i32
    return %arg0, %c0_i32 : i32, i32
  }
  func.func @transform_1(%arg0: i32) -> (i32, i32) {
    %c0_i32 = arith.constant 0 : i32
    %c0_i32_0 = arith.constant 0 : i32
    %c0_i32_1 = arith.constant 0 : i32
    return %c0_i32, %c0_i32_0 : i32, i32
  }
  func.func @transform_2(%arg0: i32) -> (i32, i32) {
    %c0_i32 = arith.constant 0 : i32
    %c0_i32_0 = arith.constant 0 : i32
    %c0_i32_1 = arith.constant 0 : i32
    return %c0_i32, %c0_i32_0 : i32, i32
  }
  func.func @transform_3(%arg0: i32) -> (i32, i32) {
    %c0_i32 = arith.constant 0 : i32
    %c0_i32_0 = arith.constant 0 : i32
    %c0_i32_1 = arith.constant 0 : i32
    return %c0_i32, %c0_i32_0 : i32, i32
  }
  func.func @transform_4(%arg0: i32) -> (i32, i32) {
    %c0_i32 = arith.constant 0 : i32
    %c0_i32_0 = arith.constant 0 : i32
    %c0_i32_1 = arith.constant 0 : i32
    return %c0_i32, %c0_i32_0 : i32, i32
  }
  func.func @transform_5(%arg0: i32) -> (i32, i32) {
    %c0_i32 = arith.constant 0 : i32
    %c0_i32_0 = arith.constant 0 : i32
    %c0_i32_1 = arith.constant 0 : i32
    return %c0_i32, %c0_i32_0 : i32, i32
  }
  func.func @transform_6(%arg0: i32) -> (i32, i32) {
    %c0_i32 = arith.constant 0 : i32
    %c0_i32_0 = arith.constant 0 : i32
    %c0_i32_1 = arith.constant 0 : i32
    return %c0_i32, %c0_i32_0 : i32, i32
  }
  func.func @transform_7(%arg0: i32) -> (i32, i32) {
    %c0_i32 = arith.constant 0 : i32
    %c0_i32_0 = arith.constant 0 : i32
    %c0_i32_1 = arith.constant 0 : i32
    return %c0_i32, %c0_i32_0 : i32, i32
  }
  func.func @transform_8(%arg0: i32) -> (i32, i32) {
    %c0_i32 = arith.constant 0 : i32
    %c0_i32_0 = arith.constant 0 : i32
    %c0_i32_1 = arith.constant 0 : i32
    return %c0_i32, %c0_i32_0 : i32, i32
  }
  func.func @transform_9(%arg0: i32) -> (i32, i32) {
    %c0_i32 = arith.constant 0 : i32
    %c0_i32_0 = arith.constant 0 : i32
    %c0_i32_1 = arith.constant 0 : i32
    return %c0_i32, %c0_i32_0 : i32, i32
  }
  func.func @transform_10(%arg0: i32) -> (i32, i32) {
    %c0_i32 = arith.constant 0 : i32
    %c0_i32_0 = arith.constant 0 : i32
    %c0_i32_1 = arith.constant 0 : i32
    return %c0_i32, %c0_i32_0 : i32, i32
  }
  func.func @transform_11(%arg0: i32) -> (i32, i32) {
    %c0_i32 = arith.constant 0 : i32
    %c0_i32_0 = arith.constant 0 : i32
    %c0_i32_1 = arith.constant 0 : i32
    return %c0_i32, %c0_i32_0 : i32, i32
  }
  func.func @transform_12(%arg0: i32) -> (i32, i32) {
    %c0_i32 = arith.constant 0 : i32
    %c0_i32_0 = arith.constant 0 : i32
    %c0_i32_1 = arith.constant 0 : i32
    return %c0_i32, %c0_i32_0 : i32, i32
  }
  func.func @transform_13(%arg0: i32) -> (i32, i32) {
    %c0_i32 = arith.constant 0 : i32
    %c0_i32_0 = arith.constant 0 : i32
    %c0_i32_1 = arith.constant 0 : i32
    return %c0_i32, %c0_i32_0 : i32, i32
  }
  func.func @transform_14(%arg0: i32) -> (i32, i32) {
    %c0_i32 = arith.constant 0 : i32
    %c0_i32_0 = arith.constant 0 : i32
    %c0_i32_1 = arith.constant 0 : i32
    return %c0_i32, %c0_i32_0 : i32, i32
  }
  func.func @transform_15(%arg0: i32) -> (i32, i32) {
    %c0_i32 = arith.constant 0 : i32
    %c0_i32_0 = arith.constant 0 : i32
    %c0_i32_1 = arith.constant 0 : i32
    return %c0_i32, %c0_i32_0 : i32, i32
  }
  func.func @transform_16(%arg0: i32) -> (i32, i32) {
    %c0_i32 = arith.constant 0 : i32
    %c0_i32_0 = arith.constant 0 : i32
    %c0_i32_1 = arith.constant 0 : i32
    return %c0_i32, %c0_i32_0 : i32, i32
  }
  func.func @transform_17(%arg0: i32) -> (i32, i32) {
    %c0_i32 = arith.constant 0 : i32
    %c0_i32_0 = arith.constant 0 : i32
    return %arg0, %c0_i32 : i32, i32
  }
}

</mosaic_0001>

<bundles_post_ra>
// kernel: tpu_custom_call.1
= control target key start
LH: loop header
LB: loop body
LE: loop exit
PB: predicated region body
PF: predicated region fallthrough
CT: control target
= control target key end

     0   :  { %s3535_s0 = inlined_call_operand.hbm [shape: f32[16,32], index: 0, kind: input, shape index: {}]   ;;  %s3536_s1 = inlined_call_operand.vmem [shape: f32[1,32], index: 1, kind: input, shape index: {}]   ;;  %s3537_s2 = inlined_call_operand.vmem [shape: f32[1,32], index: 2, kind: input, shape index: {}]   ;;  %s3538_s3 = inlined_call_operand.vmem [shape: f32[32,32], index: 3, kind: input, shape index: {}]   ;;  %s3539_s4 = inlined_call_operand.vmem [shape: f32[1,32], index: 4, kind: input, shape index: {}]   ;;  %s3540_s5 = inlined_call_operand.vmem [shape: f32[32,32], index: 5, kind: input, shape index: {}]   ;;  %s3541_s6 = inlined_call_operand.vmem [shape: f32[1,32], index: 6, kind: input, shape index: {}]   ;;  %s3542_s7 = inlined_call_operand.vmem [shape: f32[32,32], index: 7, kind: input, shape index: {}]   ;;  %s3543_s8 = inlined_call_operand.vmem [shape: f32[1,32], index: 8, kind: input, shape index: {}]   ;;  %s3544_s9 = inlined_call_operand.vmem [shape: f32[32,32], index: 9, kind: input, shape index: {}]   ;;  %s3545_s10 = inlined_call_operand.vmem [shape: f32[1,32], index: 10, kind: input, shape index: {}]   ;;  %s3546_s11 = inlined_call_operand.vmem [shape: f32[1,32], index: 11, kind: input, shape index: {}]   ;;  %s3547_s12 = inlined_call_operand.vmem [shape: f32[1,32], index: 12, kind: input, shape index: {}]   ;;  %s3548_s13 = inlined_call_operand.vmem [shape: f32[32,128], index: 13, kind: input, shape index: {}]   ;;  %s3549_s14 = inlined_call_operand.vmem [shape: f32[1,128], index: 14, kind: input, shape index: {}]   ;;  %s3550_s15 = inlined_call_operand.vmem [shape: f32[128,32], index: 15, kind: input, shape index: {}]   ;;  %s3551_s16 = inlined_call_operand.vmem [shape: f32[1,32], index: 16, kind: input, shape index: {}]   ;;  %s3552_s17 = inlined_call_operand.hbm [shape: f32[16,32], index: 17, kind: output, shape index: {}]  }
   0x1   :  { %3562 = sst [smem:[#allocation12_spill]] %s3535_s0 }
   0x2   :  { %3563 = sst [smem:[#allocation13_spill]] %s3536_s1 }
   0x3   :  { %3564 = sst [smem:[#allocation14_spill]] %s3537_s2 }
   0x4   :  { %3565 = sst [smem:[#allocation15_spill]] %s3549_s14 }
   0x5   :  { %3566 = sst [smem:[#allocation16_spill]] %s3551_s16 }
   0x6   :  { %3567 = sst [smem:[#allocation17_spill]] %s3552_s17 }
   0x7   :  { %22 = vsyncpa [#allocation3], 0 }
   0x8   :  { %24 = vsyncpa [#allocation3 + $0x1], 0 }
   0x9   :  { %25 = vsyncpa [#allocation4], 0 }
   0xa   :  { %27 = vsyncpa [#allocation4 + $0x1], 0  ;;  %s3030_s24 = smov 0   ;;  %s3032_s25 = smov 0  }
   0xb   :  { %s3034_s26 = smov 0   ;;  %s3036_s27 = smov 0  }
   0xc LB: > { %3568 = sst [smem:[#allocation8_spill]] %s2913_s24  ;;  %s3051_s28 = sadd.s32 4294967295, %s2925_s27   ;;  %s2925_s27 = sphi %s3036_s27, %s3592_s27   ;;  %s2921_s26 = sphi %s3034_s26, %s3596_s26   ;;  %s2917_s25 = sphi %s3032_s25, %s3595_s25   ;;  %s2913_s24 = sphi %s3030_s24, %s3594_s24  }
   0xd   : > { %s2463_s29 = sadd.s32 4294967294, %s2925_s27   ;;  %s3055_s0 = sadd.s32 1, %s2925_s27  }
   0xe   : > { %3569 = sst [smem:[#allocation9_spill]] %s3055_s0  ;;  %s40_s30 = sadd.s32 1, %s2921_s26 }
   0xf   : > { %s37_s18 = ssub.s32 %s2925_s27, %s3055_s0  ;;  %p47_p0 = scmp.ne.s32.totalorder %s2921_s26, %s2917_s25 }
  0x10   : > { %p38_p1 = scmp.eq.s32.totalorder %s37_s18, 0  ;;  %p48_p2 = scmp.eq.s32.totalorder %s2925_s27, 0 }
  0x11   : > { %p53_p3 = scmp.ne.s32.totalorder %s2917_s25, %s2913_s24  ;;  %p54_p4 = scmp.eq.s32.totalorder %s3051_s28, 0 }
  0x12   : > { %s3067_s19 = scalar_select %p38_p1, %s2921_s26, %s40_s30  }
  0x13   : > { %p3069_p5 = por %p48_p2, %p47_p0  ;;  %p3073_p6 = por %p54_p4, %p53_p3 }
  0x14   : > { %3570 = sst [smem:[#allocation10_spill]] %s3067_s19  ;;  %p413_p7 = scmp.eq.s32.totalorder %s3051_s28, 1 }
  0x15   : > { %p419_p8 = scmp.eq.s32.totalorder %s2463_s29, 1  ;;  %p2764_p10 = scmp.lt.s32.totalorder %s2925_s27, 2 }
  0x16   : > { %p3080_p11 = por %p413_p7, %p47_p0  ;;  %s487_s23 = sand.u32 1, %s2921_s26  }
  0x17   : > { %p3084_p12 = por %p419_p8, %p53_p3  ;;  %s2467_s30 = sshll.u32 %s2925_s27, 7 }
  0x18   : > { %s3573_s21 = scalar_select %p3080_p11, 1, 0 }
  0x19   : > { %s3575_s22 = scalar_select %p3084_p12, 1, 0 }
  0x1a   : > { %3574 = sst [smem:[#allocation11_spill]] %s3573_s21  ;;  %s2466_s18 = sshll.u32 %s487_s23, 3 }
  0x1b   : > { %s3576_s24 = sld [smem:[#allocation12_spill]]  ;;  %s491_s29 = scalar_lea.vmem [#allocation2], %s2466_s18 }
  0x1c   : > { %s498_s14 = sshll.u32 %s491_s29, 4  ;;  %p3097_p13 = pnand %p2764_p10, %p3069_p5  ;;  %s3101_s14 = int_to_ptr.vmem [resolvable:$true] %s498_s14 }
  0x1d   : > { %s488_s0 = scalar_lea.sflag [#allocation3], %s487_s23 }
  0x1e   : > { %p2831_p3 = pneg %p3097_p13 }
  0x21   : > { %s3577_s17 = smov %s3576_s24  ;;  %s3093_s16 = scalar_lea.hbm %s3576_s24, %s2467_s30 }
  0x22   : > { %s2829_s24 = scalar_lea.hbm %s3093_s16, 128  ;;  %s2834_s30 = scalar_lea.hbm %s3577_s17, 256 }
  0x23   : > { %p2830_p2 = scmp.ne.s32.totalorder %s3093_s16, %s2829_s24  ;;  %p2835_p5 = scmp.lt.u32.totalorder %s3093_s16, %s3577_s17 }
  0x24   : > { %p2836_p8 = scmp.lt.u32.totalorder %s2834_s30, %s2829_s24  ;;  %p2838_p9 = scmp.lt.u32.totalorder %s2829_s24, %s3093_s16 }
  0x25   : > { %p2832_p4 = pnand %p2831_p3, %p2830_p2 }
  0x26   : > { %p2837_p10 = por %p2836_p8, %p2835_p5 }
  0x27   : > { %p2833_p7 = pneg %p2832_p4 }
  0x28   : > { %p2839_p0 = por %p2838_p9, %p2837_p10 }
  0x2a   : > { %p2840_p1 = pnand %p2839_p0, %p2833_p7 }
  0x2c   : > { %2843 = shalt.err (!%p2840_p1)
}
  0x2d   : > { %s2844_s23 = scalar_lea.vmem %s3101_s14, 128  ;;  %s2927_s19 = smov [#allocation2]  }
  0x2e   : > { %p2845_p2 = scmp.ne.s32.totalorder %s3101_s14, %s2844_s23  ;;  %s2849_s1 = sshll.u32 %s2927_s19, 4  ;;  %s2850_s1 = int_to_ptr.vmem [resolvable:$false] %s2849_s1 }
  0x2f   : > { %s2851_s18 = scalar_lea.vmem %s2850_s1, 256  ;;  %p2852_p11 = scmp.lt.s32.totalorder %s3101_s14, %s2850_s1 }
  0x30   : > { %p2847_p4 = pnand %p2845_p2, %p2831_p3  ;;  %p2853_p5 = scmp.lt.s32.totalorder %s2851_s18, %s2844_s23 }
  0x32   : > { %p2848_p12 = pneg %p2847_p4  ;;  %p2854_p8 = por %p2853_p5, %p2852_p11 }
  0x34   : > { %p2855_p9 = pnand %p2854_p8, %p2848_p12 }
  0x36   : > { %2858 = shalt.err (!%p2855_p9)
}
  0x37   : > { %2759 = dma.hbm_to_vmem [thread:$0]  (!%p3097_p13), %s3093_s16, 128, %s3101_s14, %s488_s0  }
  0x38   : > { %p3579_p0 = scmp.lt.s32.totalorder %s2925_s27, 3  ;;  %p3580_p1 = scmp.ge.s32.totalorder %s2925_s27, 1 }
  0x3a   : > { %p504_p3 = pnand %p3580_p1, %p3579_p0 }
  0x3b   : > { %s3135_s24 = sand.u32 (!%p504_p3), 1, %s2917_s25  }
  0x3c   : > { %507 = sbr.rel (%p504_p3) target bundleno = 2628 (0xa44), region = 88  ;;  %s3561_s30 = sshll.u32 (!%p504_p3), %s3135_s24, 3 }
  0x3d   : > { %s510_s29 = scalar_lea.sflag (!%p504_p3), [#allocation3], %s3135_s24  ;;  %s513_s21 = scalar_lea.vmem (!%p504_p3), [#allocation2], %s3561_s30 }
  0x43   : > { %2904 = dma.done.wait (%p3073_p6), %s510_s29, 128  }
  0x44   : > { %2906 = vsyncadd (%p3073_p6), %s510_s29, 4294967168  ;;  %vm567_vm0 = vcmask 261120   ;;  %v3145_v0 = vld [vmem:[%s513_s21] sm:$0xff]  ;;  %v598_v9 = vld [vmem:[%s3538_s3 + $0x10] sm:$0xff]  ;;  %v2928_v10 = vmov 0.0|0.0   ;;  %vm2929_vm1 = vmmov 0   ;;  %v857_v48 = vlaneseq }
  0x45   : > { %v568_v1 = vsel %vm567_vm0, %v3145_v0, 0.0  ;;  %v596_v7 = vld [vmem:[%s3538_s3] sm:$0xff]  ;;  %v597_v8 = vld [vmem:[%s3538_s3 + $0x8] sm:$0xff]  ;;  %2698 = vmatprep.subr.bf16.mxu1 %v2928_v10  ;;  %v599_v12 = vld [vmem:[%s3538_s3 + $0x18] sm:$0xff]  ;;  %v2930_v13 = vmov 0.0   ;;  %s3581_s14 = sld [smem:[#allocation13_spill]] }
  0x46   : > { %569 = vadd.xlane.f32.xlu0 %v568_v1  ;;  %v2699_v11 = vpack.c.bf16 %v597_v8, %v596_v7  ;;  %2576 = vmatprep.mubr.msk.f32.mxu1 %vm2929_vm1, %v2930_v13  ;;  %v2702_v14 = vpack.c.bf16 %v599_v12, %v598_v9  ;;  %v680_v21 = vld [vmem:[%s3540_s5] sm:$0xff]  ;;  %v681_v22 = vld [vmem:[%s3540_s5 + $0x8] sm:$0xff]  ;;  %s3582_s2 = sld [smem:[#allocation14_spill]]  ;;  %v682_v27 = vld [vmem:[%s3540_s5 + $0x10] sm:$0xff]  ;;  %s2931_s21 = smov 104   ;;  %v3229_v52 = vshrl.u32 %v857_v48, 7 }
  0x47   : > { %2611 = vmatprep.subr.mxu0 %v2930_v13  ;;  %2613 = vmatprep.mubr.msk.f32.mxu0 %vm2929_vm1, %v2930_v13  ;;  %v2705_v25 = vpack.c.bf16 %v681_v22, %v680_v21  ;;  %v683_v28 = vld [vmem:[%s3540_s5 + $0x18] sm:$0xff]  ;;  %v761_v30 = vld [vmem:[%s3542_s7] sm:$0xff]  ;;  %v762_v31 = vld [vmem:[%s3542_s7 + $0x8] sm:$0xff]  ;;  %s2933_s30 = smov 112   ;;  %v2934_v46 = vmov 1983009808  }
  0x48   : > { %2700 = vmatpush3.bf16.msra.mxu1 %v2699_v11  ;;  %v2708_v29 = vpack.c.bf16 %v683_v28, %v682_v27  ;;  %v2711_v32 = vpack.c.bf16 %v762_v31, %v761_v30  ;;  %v763_v33 = vld [vmem:[%s3542_s7 + $0x10] sm:$0xff]  ;;  %v764_v34 = vld [vmem:[%s3542_s7 + $0x18] sm:$0xff]  ;;  %v2475_v38 = vld [vmem:[%s3541_s6] ss:$0 sm:$0xff]  ;;  %v855_v47 = vunpack.c.l.s4 %v2934_v46  ;;  %v2935_v49 = vmov 1934713408  }
  0x49   : > { %2701 = vmatprep.subr.bf16.mxu1 %v2928_v10  ;;  %v2714_v35 = vpack.c.bf16 %v764_v34, %v763_v33  ;;  %v2473_v42 = vld [vmem:[%s3539_s4] ss:$0 sm:$0xff]  ;;  %v887_v50 = vunpack.c.l.s4 %v2935_v49  ;;  %vm1280_vm2 = vcmask 64512   ;;  %s2937_s0 = smov 8   ;;  %s2938_s23 = smov 24   ;;  %vm2081_vm4 = vcmask 130048  }
  0x4a   : > { %v856_v51 = vunpack.c.0.s8 %v855_v47  ;;  %vm2083_vm5 = vcmask 195584   ;;  %s2939_s20 = smov [#allocation5]  }
  0x4b   : > { %v2471_v19 = vld [vmem:[%s3581_s14] ss:$0 sm:$0xff]  ;;  %s2932_s14 = smov 120   ;;  %v888_v55 = vunpack.c.0.s8 %v887_v50 }
  0x4c   : > { %2703 = vmatpush3.bf16.msra.mxu1 %v2702_v14  ;;  %v2472_v23 = vld [vmem:[%s3582_s2] ss:$0 sm:$0xff]  ;;  %v3232_v56 = vsub.s32 %v856_v51, %v3229_v52 }
  0x4d   : > { %2704 = vmatprep.subr.bf16.mxu1 %v2928_v10  ;;  %v3235_v62 = vsub.s32 %v888_v55, %v3229_v52 }
  0xd3   : > { %v570_v2 = vpop.xlane.xlu0 %569 }
  0xd4   : > { %v572_v3 = vmul.f32 0.03125, %v570_v2 }
  0xd6   : > { %v573_v4 = vsub.f32 %v3145_v0, %v572_v3 }
  0xd8   : > { %v574_v5 = vmul.f32 %v573_v4, %v573_v4 }
  0xda   : > { %v575_v6 = vsel %vm567_vm0, %v574_v5, 0.0 }
  0xdb   : > { %576 = vadd.xlane.f32.xlu0 %v575_v6 }
 0x168   : > { %v577_v15 = vpop.xlane.xlu0 %576 }
 0x169   : > { %v578_v16 = vmul.f32 0.03125, %v577_v15 }
 0x16b   : > { %v579_v17 = vadd.f32 1e-05, %v578_v16 }
 0x16d   : > { %2809 = vrsqrt.f32 %v579_v17 }
 0x177   : > { %v2810_v18 = vpop.eup %2809 }
 0x178   : > { %v581_v20 = vmul.f32 %v2810_v18, %v573_v4 }
 0x17a   : > { %v588_v24 = vmul.f32 %v2471_v19, %v581_v20 }
 0x17c   : > { %v595_v26 = vadd.f32 %v2472_v23, %v588_v24 }
 0x17e   : > { %2577 = vmatmul.mubr.msk.f32.vlgmr.msra.gmra.mrb[0].mxu1 %vm567_vm0, %v595_v26 }
 0x17f   : > { %2706 = vmatpush3.bf16.msra.mxu1 %v2705_v25  ;;  %2587 = vmatprep.mubr.msk.f32.mxu1 %vm2929_vm1, %v2930_v13 }
 0x180   : > { %2707 = vmatprep.subr.bf16.mxu1 %v2928_v10 }
 0x183   : > { %2709 = vmatpush3.bf16.msra.mxu1 %v2708_v29 }
 0x184   : > { %2710 = vmatprep.subr.bf16.mxu1 %v2928_v10 }
 0x186   : > { %2588 = vmatmul.mubr.msk.f32.vlgmr.msra.gmra.mrb[2].mxu1 %vm567_vm0, %v595_v26 }
 0x187   : > { %2712 = vmatpush3.bf16.msra.mxu1 %v2711_v32  ;;  %2598 = vmatprep.mubr.msk.f32.mxu1 %vm2929_vm1, %v2930_v13 }
 0x188   : > { %2713 = vmatprep.subr.bf16.mxu1 %v2928_v10 }
 0x18b   : > { %2715 = vmatpush3.bf16.msra.mxu1 %v2714_v35 }
 0x18c   : > { %2601 = vmatprep.subr.mxu1 %v2930_v13 }
 0x18e   : > { %2599 = vmatmul.mubr.msk.f32.vlgmr.msra.gmra.mrb[4].mxu1 %vm567_vm0, %v595_v26 }
 0x18f   : > { %2603 = vmatprep.mubr.msk.f32.mxu1 %vm2929_vm1, %v2930_v13 }
 0x251   : > { %v676_v36 = vpop.f32.mrb[0].mxu1 }
 0x252   : > { %v2578_v37 = vpop.f32.mrb[1].mxu1  ;;  %v677_v44 = vadd.f32 %v2473_v42, %v676_v36 }
 0x259   : > { %v757_v39 = vpop.f32.mrb[2].mxu1 }
 0x25a   : > { %v758_v40 = vadd.f32 %v2475_v38, %v757_v39  ;;  %v2589_v41 = vpop.f32.mrb[3].mxu1 }
 0x25c   : > { %995 = vrot.lane.b32.xlu0 %v758_v40, %s2931_s21  ;;  %989 = vrot.lane.b32.xlu1 %v758_v40, %s2932_s14 }
 0x260   : > { %992 = vrot.lane.b32.xlu1 %v758_v40, %s2933_s30 }
 0x261   : > { %v3223_v43 = vpop.f32.mrb[4].mxu1 }
 0x262   : > { %v2600_v45 = vpop.f32.mrb[5].mxu1 }
 0x264   : > { %843 = vrot.lane.b32.xlu1 %v677_v44, %s2932_s14 }
 0x268   : > { %846 = vrot.lane.b32.xlu1 %v677_v44, %s2933_s30 }
 0x26c   : > { %849 = vrot.lane.b32.xlu1 %v677_v44, %s2931_s21 }
 0x2ce   : > { %v996_v53 = vpop.permute.xlu0 %995  ;;  %v990_v54 = vpop.permute.xlu1 %989 }
 0x2cf   : > { %v1014_v57 = vcombine.low %v990_v54, %v996_v53  ;;  %v1015_v58 = vcombine.high %v990_v54, %v996_v53 }
 0x2d1   : > { %v1022_v63 = vrot.slane %v1014_v57, %v3232_v56  ;;  %v1029_v1 = vrot.slane %v1015_v58, %v3232_v56 }
 0x2d2   : > { %v993_v59 = vpop.permute.xlu1 %992 }
 0x2d3   : > { %v998_v60 = vcombine.low %v758_v40, %v993_v59  ;;  %v999_v61 = vcombine.high %v758_v40, %v993_v59 }
 0x2d5   : > { %v1006_v2 = vrot.slane %v998_v60, %v3232_v56  ;;  %v1013_v3 = vrot.slane %v999_v61, %v3232_v56 }
 0x2d6   : > { %v844_v4 = vpop.permute.xlu1 %843 }
 0x2d7   : > { %v1030_v5 = vcombine.low %v1006_v2, %v1022_v63  ;;  %v1031_v6 = vcombine.high %v1006_v2, %v1022_v63  ;;  %v1046_v7 = vcombine.low %v1013_v3, %v1029_v1  ;;  %v1047_v8 = vcombine.high %v1013_v3, %v1029_v1 }
 0x2d9   : > { %v1038_v9 = vrot.slane %v1030_v5, %v3235_v62  ;;  %v1045_v11 = vrot.slane %v1031_v6, %v3235_v62  ;;  %v1054_v12 = vrot.slane %v1046_v7, %v3235_v62  ;;  %v1061_v14 = vrot.slane %v1047_v8, %v3235_v62 }
 0x2da   : > { %v847_v15 = vpop.permute.xlu1 %846 }
 0x2db   : > { %v1066_v16 = vcombine.low %v1038_v9, %v1045_v11  ;;  %v2481_v17 = vcombine.high %v1038_v9, %v1045_v11  ;;  %v1082_v18 = vcombine.low %v1054_v12, %v1061_v14  ;;  %v2482_v19 = vcombine.high %v1054_v12, %v1061_v14 }
 0x2dc   : > { %v852_v20 = vcombine.low %v677_v44, %v847_v15  ;;  %v853_v21 = vcombine.high %v677_v44, %v847_v15 }
 0x2dd   : > { %v1073_v22 = vrot.slane %v1066_v16, %v3232_v56  ;;  %v1081_v23 = vrot.slane %v2481_v17, %v3232_v56  ;;  %v1089_v24 = vrot.slane %v1082_v18, %v3232_v56  ;;  %v1097_v25 = vrot.slane %v2482_v19, %v3232_v56 }
 0x2de   : > { %v850_v26 = vpop.permute.xlu1 %849  ;;  %v860_v31 = vrot.slane %v852_v20, %v3232_v56  ;;  %v867_v32 = vrot.slane %v853_v21, %v3232_v56  ;;  %v1588_v17 = vand.u32 127, %v857_v48 }
 0x2df   : > { %v1098_v27 = vcombine.low %v1073_v22, %v1081_v23  ;;  %v1114_v28 = vcombine.low %v1089_v24, %v1097_v25  ;;  %v868_v29 = vcombine.low %v844_v4, %v850_v26  ;;  %v869_v30 = vcombine.high %v844_v4, %v850_v26 }
 0x2e0   : > { %v1099_v33 = vcombine.high %v1073_v22, %v1081_v23  ;;  %v1115_v34 = vcombine.high %v1089_v24, %v1097_v25  ;;  %vm1589_vm3 = vcmp.ge.s32.totalorder %v3229_v52, %v1588_v17 }
 0x2e1   : > { %v876_v35 = vrot.slane %v868_v29, %v3232_v56  ;;  %v883_v36 = vrot.slane %v869_v30, %v3232_v56  ;;  %v1106_v37 = vrot.slane %v1098_v27, %v3235_v62  ;;  %v1122_v38 = vrot.slane %v1114_v28, %v3235_v62 }
 0x2e2   : > { %v1113_v39 = vrot.slane %v1099_v33, %v3235_v62  ;;  %v1129_v40 = vrot.slane %v1115_v34, %v3235_v62  ;;  %v2477_v33 = vld [vmem:[%s3543_s8] ss:$0 sm:$0xff] }
 0x2e3   : > { %v884_v41 = vcombine.low %v860_v31, %v876_v35  ;;  %v885_v42 = vcombine.high %v860_v31, %v876_v35  ;;  %v900_v44 = vcombine.low %v867_v32, %v883_v36  ;;  %v901_v45 = vcombine.high %v867_v32, %v883_v36 }
 0x2e4   : > { %v1130_v46 = vcombine.low %v1106_v37, %v1122_v38  ;;  %v1132_v47 = vcombine.low %v1113_v39, %v1129_v40  ;;  %v1131_v12 = vcombine.high %v1106_v37, %v1122_v38  ;;  %v1133_v15 = vcombine.high %v1113_v39, %v1129_v40 }
 0x2e5   : > { %v892_v49 = vrot.slane %v884_v41, %v3235_v62  ;;  %v899_v50 = vrot.slane %v885_v42, %v3235_v62  ;;  %v908_v51 = vrot.slane %v900_v44, %v3235_v62  ;;  %v915_v53 = vrot.slane %v901_v45, %v3235_v62 }
 0x2e6   : > { %2602 = vmatpush3.xpose.msk.msra.mxu1 %vm1280_vm2, %v1130_v46  ;;  %2612 = vmatpush3.xpose.msk.msra.mxu0 %vm1280_vm2, %v1132_v47  ;;  %v839_v34 = vadd.f32 %v2477_v33, %v3223_v43 }
 0x2e7   : > { %v920_v54 = vcombine.low %v892_v49, %v899_v50  ;;  %v2479_v55 = vcombine.high %v892_v49, %v899_v50  ;;  %v936_v57 = vcombine.low %v908_v51, %v915_v53  ;;  %v2480_v58 = vcombine.high %v908_v51, %v915_v53  ;;  %2606 = vmatprep.subr.mxu1 %v2930_v13 }
 0x2e8   : > { %2621 = vmatprep.subr.mxu0 %v2930_v13 }
 0x2e9   : > { %v927_v59 = vrot.slane %v920_v54, %v3232_v56  ;;  %v935_v60 = vrot.slane %v2479_v55, %v3232_v56  ;;  %v943_v61 = vrot.slane %v936_v57, %v3232_v56  ;;  %v951_v63 = vrot.slane %v2480_v58, %v3232_v56 }
 0x2eb   : > { %v952_v1 = vcombine.low %v927_v59, %v935_v60  ;;  %v968_v2 = vcombine.low %v943_v61, %v951_v63  ;;  %v953_v3 = vcombine.high %v927_v59, %v935_v60  ;;  %v969_v4 = vcombine.high %v943_v61, %v951_v63 }
 0x2ed   : > { %v960_v5 = vrot.slane %v952_v1, %v3235_v62  ;;  %v976_v6 = vrot.slane %v968_v2, %v3235_v62  ;;  %v967_v7 = vrot.slane %v953_v3, %v3235_v62  ;;  %v983_v8 = vrot.slane %v969_v4, %v3235_v62 }
 0x2ef   : > { %v984_v9 = vcombine.low %v960_v5, %v976_v6  ;;  %v986_v11 = vcombine.low %v967_v7, %v983_v8  ;;  %v985_v14 = vcombine.high %v960_v5, %v976_v6  ;;  %v987_v16 = vcombine.high %v967_v7, %v983_v8 }
 0x2f1   : > { %2604 = vmatmul.mubr.msk.f32.vlgmr.msra.gmra.mrb[6].mxu1 %vm1280_vm2, %v984_v9  ;;  %2614 = vmatmul.mubr.msk.f32.vlgmr.msra.gmra.mrb[0].mxu0 %vm1280_vm2, %v986_v11 }
 0x2f2   : > { %2607 = vmatpush3.xpose.msk.msra.mxu1 %vm1280_vm2, %v1131_v12  ;;  %2608 = vmatprep.mubr.msk.f32.mxu1 %vm2929_vm1, %v2930_v13 }
 0x2f3   : > { %2616 = vmatprep.subr.mxu1 %v2930_v13  ;;  %2623 = vmatprep.mubr.msk.f32.mxu0 %vm2929_vm1, %v2930_v13 }
 0x2f5   : > { %2609 = vmatmul.mubr.msk.f32.vlgmr.msra.gmra.mrb[8].mxu1 %vm1280_vm2, %v985_v14 }
 0x2f6   : > { %2617 = vmatpush3.xpose.msk.msra.mxu1 %vm1280_vm2, %v1133_v15  ;;  %2618 = vmatprep.mubr.msk.f32.mxu1 %vm2929_vm1, %v2930_v13 }
 0x2f7   : > { %2626 = vmatprep.subr.mxu1 %v2930_v13 }
 0x2f9   : > { %2619 = vmatmul.mubr.msk.f32.vlgmr.msra.gmra.mrb[10].mxu1 %vm1280_vm2, %v987_v16 }
 0x2fa   : > { %2628 = vmatprep.mubr.msk.f32.mxu1 %vm2929_vm1, %v2930_v13 }
 0x3c4   : > { %v1353_v18 = vpop.f32.mrb[6].mxu1  ;;  %v1505_v19 = vpop.f32.mrb[0].mxu0 }
 0x3c5   : > { %v1592_v20 = vsel %vm1589_vm3, %v1353_v18, -1e+30  ;;  %v2605_v21 = vpop.f32.mrb[7].mxu1  ;;  %v2615_v22 = vpop.f32.mrb[1].mxu0  ;;  %v1594_v24 = vsel %vm1589_vm3, %v1505_v19, -1e+30 }
 0x3c6   : > { %v1596_v23 = vsel %vm1280_vm2, %v1592_v20, -inf  ;;  %v1602_v27 = vsel %vm1280_vm2, %v1594_v24, -inf }
 0x3c7   : > { %1597 = vmax.xlane.f32.xlu1 %v1596_v23 }
 0x3c8   : > { %v1429_v25 = vpop.f32.mrb[8].mxu1 }
 0x3c9   : > { %v1593_v26 = vsel %vm1589_vm3, %v1429_v25, -1e+30  ;;  %v2610_v48 = vpop.f32.mrb[9].mxu1 }
 0x3ca   : > { %v1599_v28 = vsel %vm1280_vm2, %v1593_v26, -inf }
 0x3cb   : > { %1603 = vmax.xlane.f32.xlu1 %v1602_v27  ;;  %1600 = vmax.xlane.f32.xlu0 %v1599_v28 }
 0x3cc   : > { %v1581_v29 = vpop.f32.mrb[10].mxu1 }
 0x3cd   : > { %v1595_v30 = vsel %vm1589_vm3, %v1581_v29, -1e+30  ;;  %v2620_v31 = vpop.f32.mrb[11].mxu1 }
 0x3ce   : > { %v1605_v32 = vsel %vm1280_vm2, %v1595_v30, -inf }
 0x3cf   : > { %1606 = vmax.xlane.f32.xlu1 %v1605_v32 }
 0x3e0   : > { %1138 = vrot.lane.b32.xlu1 %v839_v34, %s2933_s30  ;;  %s2936_s30 = smov 16  }
 0x454   : > { %v1598_v35 = vpop.xlane.xlu1 %1597 }
 0x455   : > { %v1608_v36 = vsub.f32 %v1592_v20, %v1598_v35 }
 0x457   : > { %v1612_v37 = vmul.f32 1.442695, %v1608_v36 }
 0x458   : > { %v1604_v38 = vpop.xlane.xlu1 %1603  ;;  %v1601_v39 = vpop.xlane.xlu0 %1600 }
 0x459   : > { %2811 = vpow2.f32 %v1612_v37  ;;  %v1610_v52 = vsub.f32 %v1594_v24, %v1604_v38  ;;  %v1609_v40 = vsub.f32 %v1593_v26, %v1601_v39 }
 0x45b   : > { %v1616_v41 = vmul.f32 1.442695, %v1610_v52  ;;  %v1614_v42 = vmul.f32 1.442695, %v1609_v40 }
 0x45c   : > { %v1607_v44 = vpop.xlane.xlu1 %1606 }
 0x45d   : > { %2813 = vpow2.f32 %v1616_v41  ;;  %v1611_v45 = vsub.f32 %v1595_v30, %v1607_v44 }
 0x45e   : > { %2815 = vpow2.f32 %v1614_v42 }
 0x45f   : > { %v1618_v46 = vmul.f32 1.442695, %v1611_v45 }
 0x460   : > { %v1139_v57 = vpop.permute.xlu1 %1138 }
 0x461   : > { %2817 = vpow2.f32 %v1618_v46  ;;  %v1144_v63 = vcombine.low %v839_v34, %v1139_v57  ;;  %v1145_v1 = vcombine.high %v839_v34, %v1139_v57 }
 0x463   : > { %v3308_v47 = vpop.eup %2811  ;;  %v1152_v6 = vrot.slane %v1144_v63, %v3232_v56  ;;  %v1159_v7 = vrot.slane %v1145_v1, %v3232_v56 }
 0x464   : > { %v1620_v43 = vsel %vm1280_vm2, %v3308_v47, 0.0 }
 0x465   : > { %1621 = vadd.xlane.f32.xlu0 %v1620_v43  ;;  %v2086_v43 = vld [vmem:[%s3544_s9 + $0x8] sm:$0xff] }
 0x467   : > { %v3312_v49 = vpop.eup %2813 }
 0x468   : > { %v2816_v50 = vpop.eup %2815  ;;  %v1626_v51 = vsel %vm1280_vm2, %v3312_v49, 0.0 }
 0x469   : > { %1627 = vadd.xlane.f32.xlu0 %v1626_v51  ;;  %v1623_v53 = vsel %vm1280_vm2, %v2816_v50, 0.0 }
 0x46a   : > { %1624 = vadd.xlane.f32.xlu1 %v1623_v53 }
 0x46b   : > { %v3317_v54 = vpop.eup %2817 }
 0x46c   : > { %v1629_v55 = vsel %vm1280_vm2, %v3317_v54, 0.0 }
 0x46e   : > { %1630 = vadd.xlane.f32.xlu1 %v1629_v55 }
 0x47f   : > { %1141 = vrot.lane.b32.xlu1 %v839_v34, %s2931_s21  ;;  %1135 = vrot.lane.b32.xlu0 %v839_v34, %s2932_s14  ;;  %s3583_s21 = sld [smem:[#allocation15_spill]]  ;;  %s3584_s14 = sld [smem:[#allocation11_spill]] }
 0x485   : > { %p3588_p11 = scmp.ne.s32.totalorder %s3584_s14, 0 }
 0x4f2   : > { %v1622_v58 = vpop.xlane.xlu0 %1621 }
 0x4f3   : > { %2819 = vrcp.f32 %v1622_v58 }
 0x4f6   : > { %v1628_v60 = vpop.xlane.xlu0 %1627 }
 0x4f7   : > { %v1625_v59 = vpop.xlane.xlu1 %1624 }
 0x4f8   : > { %2821 = vrcp.f32 %v1625_v59 }
 0x4f9   : > { %2823 = vrcp.f32 %v1628_v60 }
 0x4fa   : > { %v1136_v2 = vpop.permute.xlu0 %1135 }
 0x4fb   : > { %v1631_v61 = vpop.xlane.xlu1 %1630 }
 0x4fc   : > { %2825 = vrcp.f32 %v1631_v61 }
 0x4fd   : > { %v2820_v27 = vpop.eup %2819 }
 0x4fe   : > { %v1636_v40 = vmul.f32 %v2820_v27, %v3308_v47  ;;  %v2085_v47 = vld [vmem:[%s3544_s9] sm:$0xff] }
 0x4ff   : > { %v1142_v3 = vpop.permute.xlu1 %1141 }
 0x500   : > { %v1160_v4 = vcombine.low %v1136_v2, %v1142_v3  ;;  %v1161_v5 = vcombine.high %v1136_v2, %v1142_v3 }
 0x502   : > { %v1168_v8 = vrot.slane %v1160_v4, %v3232_v56  ;;  %v1175_v9 = vrot.slane %v1161_v5, %v3232_v56  ;;  %v2822_v32 = vpop.eup %2821 }
 0x503   : > { %v2824_v35 = vpop.eup %2823  ;;  %v1637_v41 = vmul.f32 %v2822_v32, %v2816_v50 }
 0x504   : > { %v1176_v11 = vcombine.low %v1152_v6, %v1168_v8  ;;  %v1177_v12 = vcombine.high %v1152_v6, %v1168_v8  ;;  %v1192_v14 = vcombine.low %v1159_v7, %v1175_v9  ;;  %v1193_v15 = vcombine.high %v1159_v7, %v1175_v9 }
 0x505   : > { %v1638_v45 = vmul.f32 %v2824_v35, %v3312_v49  ;;  %v2717_v49 = vpack.c.bf16 %v2086_v43, %v2085_v47 }
 0x506   : > { %v1184_v16 = vrot.slane %v1176_v11, %v3235_v62  ;;  %v1191_v17 = vrot.slane %v1177_v12, %v3235_v62  ;;  %v1200_v18 = vrot.slane %v1192_v14, %v3235_v62  ;;  %v1207_v19 = vrot.slane %v1193_v15, %v3235_v62  ;;  %v2826_v52 = vpop.eup %2825  ;;  %v2087_v11 = vld [vmem:[%s3544_s9 + $0x10] sm:$0xff]  ;;  %v2088_v12 = vld [vmem:[%s3544_s9 + $0x18] sm:$0xff] }
 0x507   : > { %v1639_v46 = vmul.f32 %v2826_v52, %v3317_v54 }
 0x508   : > { %v1212_v20 = vcombine.low %v1184_v16, %v1191_v17  ;;  %v2483_v21 = vcombine.high %v1184_v16, %v1191_v17  ;;  %v1228_v22 = vcombine.low %v1200_v18, %v1207_v19  ;;  %v2484_v23 = vcombine.high %v1200_v18, %v1207_v19 }
 0x509   : > { %v2720_v18 = vpack.c.bf16 %v2088_v12, %v2087_v11  ;;  %v2293_v11 = vld [vmem:[%s3550_s15 + $0x48] sm:$0xff] }
 0x50a   : > { %v1219_v24 = vrot.slane %v1212_v20, %v3232_v56  ;;  %v1227_v25 = vrot.slane %v2483_v21, %v3232_v56  ;;  %v1235_v26 = vrot.slane %v1228_v22, %v3232_v56  ;;  %v1243_v48 = vrot.slane %v2484_v23, %v3232_v56 }
 0x50c   : > { %v1244_v28 = vcombine.low %v1219_v24, %v1227_v25  ;;  %v1260_v29 = vcombine.low %v1235_v26, %v1243_v48  ;;  %v1245_v30 = vcombine.high %v1219_v24, %v1227_v25  ;;  %v1261_v31 = vcombine.high %v1235_v26, %v1243_v48 }
 0x50e   : > { %v1252_v33 = vrot.slane %v1244_v28, %v3235_v62  ;;  %v1268_v34 = vrot.slane %v1260_v29, %v3235_v62  ;;  %v1259_v36 = vrot.slane %v1245_v30, %v3235_v62  ;;  %v1275_v37 = vrot.slane %v1261_v31, %v3235_v62 }
 0x510   : > { %v1276_v38 = vcombine.low %v1252_v33, %v1268_v34  ;;  %v1277_v39 = vcombine.high %v1252_v33, %v1268_v34  ;;  %v1278_v42 = vcombine.low %v1259_v36, %v1275_v37  ;;  %v1279_v44 = vcombine.high %v1259_v36, %v1275_v37 }
 0x512   : > { %2622 = vmatpush3.msra.mxu0 %v1276_v38  ;;  %2627 = vmatpush3.msra.mxu1 %v1277_v39 }
 0x513   : > { %2624 = vmatmul.mubr.msk.f32.vlgmr.msra.gmra.mrb[2].mxu0 %vm1280_vm2, %v1636_v40  ;;  %2629 = vmatmul.mubr.msk.f32.vlgmr.msra.gmra.mrb[12].mxu1 %vm1280_vm2, %v1637_v41 }
 0x514   : > { %2631 = vmatprep.subr.mxu0 %v2930_v13  ;;  %2636 = vmatprep.subr.mxu1 %v2930_v13 }
 0x515   : > { %2632 = vmatpush3.msra.mxu0 %v1278_v42  ;;  %2637 = vmatpush3.msra.mxu1 %v1279_v44 }
 0x516   : > { %2633 = vmatprep.mubr.msk.f32.mxu0 %vm2929_vm1, %v2930_v13  ;;  %2638 = vmatprep.mubr.msk.f32.mxu1 %vm2929_vm1, %v2930_v13 }
 0x517   : > { %2634 = vmatmul.mubr.msk.f32.vlgmr.msra.gmra.mrb[4].mxu0 %vm1280_vm2, %v1638_v45  ;;  %2639 = vmatmul.mubr.msk.f32.vlgmr.msra.gmra.mrb[14].mxu1 %vm1280_vm2, %v1639_v46 }
 0x518   : > { %2716 = vmatprep.subr.bf16.mxu0 %v2928_v10  ;;  %2649 = vmatprep.mubr.msk.f32.mxu0 %vm2929_vm1, %v2930_v13 }
 0x519   : > { %2722 = vmatprep.subr.bf16.mxu1 %v2928_v10  ;;  %2660 = vmatprep.mubr.msk.f32.mxu1 %vm2929_vm1, %v2930_v13 }
 0x51a   : > { %2718 = vmatpush3.bf16.msra.mxu0 %v2717_v49 }
 0x51b   : > { %2719 = vmatprep.subr.bf16.mxu0 %v2928_v10 }
 0x51e   : > { %2721 = vmatpush3.bf16.msra.mxu0 %v2720_v18  ;;  %v2297_v18 = vld [vmem:[%s3550_s15 + $0x68] sm:$0xff] }
 0x51f   : > { %2728 = vmatprep.subr.bf16.mxu0 %v2928_v10 }
 0x5e6   : > { %v1709_v50 = vpop.f32.mrb[2].mxu0  ;;  %v1782_v51 = vpop.f32.mrb[12].mxu1 }
 0x5e7   : > { %v2625_v53 = vpop.f32.mrb[3].mxu0  ;;  %v2630_v54 = vpop.f32.mrb[13].mxu1 }
 0x5e8   : > { %v2199_v53 = vld [vmem:[%s3548_s13] sm:$0xff] }
 0x5ea   : > { %v1855_v55 = vpop.f32.mrb[4].mxu0  ;;  %v1928_v57 = vpop.f32.mrb[14].mxu1 }
 0x5eb   : > { %v1932_v58 = vcombine.low %v1709_v50, %v1855_v55  ;;  %v1933_v59 = vcombine.high %v1709_v50, %v1855_v55  ;;  %v1948_v60 = vcombine.low %v1782_v51, %v1928_v57  ;;  %v1949_v61 = vcombine.high %v1782_v51, %v1928_v57  ;;  %v2635_v63 = vpop.f32.mrb[5].mxu0  ;;  %v2640_v1 = vpop.f32.mrb[15].mxu1  ;;  %v2201_v55 = vld [vmem:[%s3548_s13 + $0x10] sm:$0xff]  ;;  %v2202_v57 = vld [vmem:[%s3548_s13 + $0x18] sm:$0xff] }
 0x5ec   : > { %v2287_v1 = vld [vmem:[%s3550_s15 + $0x18] sm:$0xff] }
 0x5ed   : > { %v1940_v2 = vrot.slane %v1932_v58, %v3232_v56  ;;  %v1947_v3 = vrot.slane %v1933_v59, %v3232_v56  ;;  %v1956_v4 = vrot.slane %v1948_v60, %v3232_v56  ;;  %v1963_v5 = vrot.slane %v1949_v61, %v3232_v56  ;;  %v2284_v59 = vld [vmem:[%s3550_s15] sm:$0xff]  ;;  %v2285_v60 = vld [vmem:[%s3550_s15 + $0x8] sm:$0xff]  ;;  %v2286_v61 = vld [vmem:[%s3550_s15 + $0x10] sm:$0xff] }
 0x5ee   : > { %v2726_v58 = vpack.c.bf16 %v2202_v57, %v2201_v55  ;;  %v2729_v63 = vpack.c.bf16 %v2285_v60, %v2284_v59 }
 0x5ef   : > { %v1964_v6 = vcombine.low %v1940_v2, %v1956_v4  ;;  %v1965_v7 = vcombine.high %v1940_v2, %v1956_v4  ;;  %v1980_v8 = vcombine.low %v1947_v3, %v1963_v5  ;;  %v1981_v9 = vcombine.high %v1947_v3, %v1963_v5  ;;  %v2288_v3 = vld [vmem:[%s3550_s15 + $0x20] sm:$0xff]  ;;  %v2289_v4 = vld [vmem:[%s3550_s15 + $0x28] sm:$0xff] }
 0x5f0   : > { %v2732_v2 = vpack.c.bf16 %v2287_v1, %v2286_v61  ;;  %v2735_v5 = vpack.c.bf16 %v2289_v4, %v2288_v3 }
 0x5f1   : > { %v1972_v14 = vrot.slane %v1964_v6, %v3235_v62  ;;  %v1979_v15 = vrot.slane %v1965_v7, %v3235_v62  ;;  %v1988_v16 = vrot.slane %v1980_v8, %v3235_v62  ;;  %v1995_v17 = vrot.slane %v1981_v9, %v3235_v62  ;;  %v2290_v6 = vld [vmem:[%s3550_s15 + $0x30] sm:$0xff]  ;;  %v2291_v7 = vld [vmem:[%s3550_s15 + $0x38] sm:$0xff]  ;;  %v2292_v9 = vld [vmem:[%s3550_s15 + $0x40] sm:$0xff] }
 0x5f2   : > { %v2738_v8 = vpack.c.bf16 %v2291_v7, %v2290_v6  ;;  %v2741_v12 = vpack.c.bf16 %v2293_v11, %v2292_v9 }
 0x5f3   : > { %v2000_v19 = vcombine.low %v1972_v14, %v1979_v15  ;;  %v2497_v20 = vcombine.high %v1972_v14, %v1979_v15  ;;  %v2016_v21 = vcombine.low %v1988_v16, %v1995_v17  ;;  %v2498_v22 = vcombine.high %v1988_v16, %v1995_v17  ;;  %v2294_v14 = vld [vmem:[%s3550_s15 + $0x50] sm:$0xff]  ;;  %v2295_v15 = vld [vmem:[%s3550_s15 + $0x58] sm:$0xff]  ;;  %v2296_v17 = vld [vmem:[%s3550_s15 + $0x60] sm:$0xff] }
 0x5f4   : > { %v2744_v16 = vpack.c.bf16 %v2295_v15, %v2294_v14 }
 0x5f5   : > { %v2007_v23 = vrot.slane %v2000_v19, %v3232_v56  ;;  %v2015_v24 = vrot.slane %v2497_v20, %v3232_v56  ;;  %v2023_v25 = vrot.slane %v2016_v21, %v3232_v56  ;;  %v2031_v26 = vrot.slane %v2498_v22, %v3232_v56 }
 0x5f6   : > { %v2747_v19 = vpack.c.bf16 %v2297_v18, %v2296_v17 }
 0x5f7   : > { %v2033_v48 = vcombine.high %v2007_v23, %v2015_v24  ;;  %v2049_v27 = vcombine.high %v2023_v25, %v2031_v26  ;;  %v2032_v28 = vcombine.low %v2007_v23, %v2015_v24  ;;  %v2048_v29 = vcombine.low %v2023_v25, %v2031_v26  ;;  %v2501_v24 = vld [vmem:[%s3546_s11] ss:$0 sm:$0xff] }
 0x5f8   : > { %v2502_v26 = vld [vmem:[%s3547_s12] ss:$0 sm:$0xff] }
 0x5f9   : > { %v2047_v30 = vrot.slane %v2033_v48, %v3235_v62  ;;  %v2063_v31 = vrot.slane %v2049_v27, %v3235_v62  ;;  %v2040_v32 = vrot.slane %v2032_v28, %v3235_v62  ;;  %v2056_v33 = vrot.slane %v2048_v29, %v3235_v62  ;;  %v2499_v62 = vld [vmem:[%s3545_s10] ss:$0 sm:$0xff]  ;;  %v2299_v28 = vld [vmem:[%s3550_s15 + $0x78] sm:$0xff] }
 0x5fb   : > { %v2066_v34 = vcombine.low %v2047_v30, %v2063_v31  ;;  %v2065_v35 = vcombine.high %v2040_v32, %v2056_v33  ;;  %v2067_v36 = vcombine.high %v2047_v30, %v2063_v31  ;;  %v2064_v37 = vcombine.low %v2040_v32, %v2056_v33  ;;  %v2503_v30 = vld [vmem:[%s3583_s21] ss:$0 sm:$0xff]  ;;  %s3587_s21 = sld [smem:[#allocation17_spill]] }
 0x5fd   : > { %2073 = vrot.lane.b32.xlu1 %v2066_v34, %s2936_s30  ;;  %2069 = vrot.lane.b32.xlu0 %v2065_v35, %s2937_s0  ;;  %s3585_s30 = sld [smem:[#allocation16_spill]]  ;;  %s2507_s0 = sshll.u32 %s3051_s28, 7 }
 0x5fe   : > { %s2380_s28 = scalar_lea.sflag [#allocation4], %s3135_s24 }
 0x601   : > { %2077 = vrot.lane.b32.xlu0 %v2067_v36, %s2938_s23  ;;  %s3586_s23 = sshll.u32 %s3135_s24, 3  ;;  %s3490_s2 = scalar_lea.hbm %s3587_s21, %s2507_s0 }
 0x602   : > { %s563_s19 = scalar_lea.vmem [#allocation5], %s3586_s23 }
 0x603   : > { %v2505_v35 = vld [vmem:[%s3585_s30] ss:$0 sm:$0xff]  ;;  %s2393_s1 = sshll.u32 %s563_s19, 4  ;;  %s2863_s30 = sshll.u32 %s2939_s20, 4  ;;  %s3492_s1 = int_to_ptr.vmem [resolvable:$true] %s2393_s1  ;;  %s2864_s30 = int_to_ptr.vmem [resolvable:$false] %s2863_s30 }
 0x604   : > { %s2859_s16 = scalar_lea.vmem %s3492_s1, 128  ;;  %s2865_s23 = scalar_lea.vmem %s2864_s30, 256 }
 0x605   : > { %p2860_p6 = scmp.ne.s32.totalorder %s3492_s1, %s2859_s16  ;;  %p2866_p7 = scmp.lt.s32.totalorder %s3492_s1, %s2864_s30 }
 0x606   : > { %p2867_p10 = scmp.lt.s32.totalorder %s2865_s23, %s2859_s16 }
 0x607   : > { %p2861_p12 = pnand %p2860_p6, %p3588_p11 }
 0x608   : > { %p2868_p2 = por %p2867_p10, %p2866_p7 }
 0x609   : > { %p2862_p13 = pneg %p2861_p12 }
 0x60b   : > { %p2869_p4 = pnand %p2868_p2, %p2862_p13 }
 0x66f   : > { %v2070_v56 = vpop.permute.xlu0 %2069  ;;  %v2074_v38 = vpop.permute.xlu1 %2073 }
 0x670   : > { %v2080_v39 = vsel %vm1280_vm2, %v2064_v37, %v2070_v56 }
 0x671   : > { %v2082_v40 = vsel %vm2081_vm4, %v2080_v39, %v2074_v38 }
 0x673   : > { %v2078_v52 = vpop.permute.xlu0 %2077 }
 0x674   : > { %v2084_v41 = vsel %vm2083_vm5, %v2082_v40, %v2078_v52 }
 0x675   : > { %2650 = vmatmul.mubr.msk.f32.vlgmr.msra.gmra.mrb[6].mxu0 %vm567_vm0, %v2084_v41 }
 0x676   : > { %2695 = vmatprep.mubr.msk.f32.mxu0 %vm2929_vm1, %v2930_v13  ;;  %2730 = vmatpush3.bf16.msra.mxu0 %v2729_v63 }
 0x677   : > { %2731 = vmatprep.subr.bf16.mxu0 %v2928_v10 }
 0x67a   : > { %2733 = vmatpush3.bf16.msra.mxu0 %v2732_v2 }
 0x67b   : > { %2734 = vmatprep.subr.bf16.mxu0 %v2928_v10 }
 0x67e   : > { %2736 = vmatpush3.bf16.msra.mxu0 %v2735_v5 }
 0x67f   : > { %2737 = vmatprep.subr.bf16.mxu0 %v2928_v10 }
 0x682   : > { %2739 = vmatpush3.bf16.msra.mxu0 %v2738_v8 }
 0x683   : > { %2740 = vmatprep.subr.bf16.mxu0 %v2928_v10 }
 0x686   : > { %2742 = vmatpush3.bf16.msra.mxu0 %v2741_v12 }
 0x687   : > { %2743 = vmatprep.subr.bf16.mxu0 %v2928_v10 }
 0x68a   : > { %2745 = vmatpush3.bf16.msra.mxu0 %v2744_v16 }
 0x68b   : > { %2746 = vmatprep.subr.bf16.mxu0 %v2928_v10 }
 0x68e   : > { %2748 = vmatpush3.bf16.msra.mxu0 %v2747_v19 }
 0x68f   : > { %2749 = vmatprep.subr.bf16.mxu0 %v2928_v10 }
 0x748   : > { %v2165_v42 = vpop.f32.mrb[6].mxu0 }
 0x749   : > { %v2166_v44 = vadd.f32 %v2499_v62, %v2165_v42  ;;  %v2651_v45 = vpop.f32.mrb[7].mxu0 }
 0x74b   : > { %v3396_v46 = vadd.f32 %v2166_v44, %v3145_v0  ;;  %v2200_v0 = vld [vmem:[%s3548_s13 + $0x8] sm:$0xff] }
 0x74c   : > { %v2723_v54 = vpack.c.bf16 %v2200_v0, %v2199_v53 }
 0x74d   : > { %v2172_v47 = vsel %vm567_vm0, %v3396_v46, 0.0 }
 0x74e   : > { %2173 = vadd.xlane.f32.xlu1 %v2172_v47  ;;  %2724 = vmatpush3.bf16.msra.mxu1 %v2723_v54 }
 0x74f   : > { %2725 = vmatprep.subr.bf16.mxu1 %v2928_v10  ;;  %v2298_v10 = vld [vmem:[%s3550_s15 + $0x70] sm:$0xff] }
 0x750   : > { %v2750_v29 = vpack.c.bf16 %v2299_v28, %v2298_v10 }
 0x752   : > { %2727 = vmatpush3.bf16.msra.mxu1 %v2726_v58  ;;  %2751 = vmatpush3.bf16.msra.mxu0 %v2750_v29 }
 0x7db   : > { %v2174_v43 = vpop.xlane.xlu1 %2173 }
 0x7dc   : > { %v2175_v49 = vmul.f32 0.03125, %v2174_v43 }
 0x7de   : > { %v2176_v50 = vsub.f32 %v3396_v46, %v2175_v49 }
 0x7e0   : > { %v2177_v51 = vmul.f32 %v2176_v50, %v2176_v50 }
 0x7e2   : > { %v2178_v13 = vsel %vm567_vm0, %v2177_v51, 0.0 }
 0x7e3   : > { %2179 = vadd.xlane.f32.xlu0 %v2178_v13 }
 0x870   : > { %v2180_v20 = vpop.xlane.xlu0 %2179 }
 0x871   : > { %v2181_v21 = vmul.f32 0.03125, %v2180_v20 }
 0x873   : > { %v2182_v22 = vadd.f32 1e-05, %v2181_v21 }
 0x875   : > { %2827 = vrsqrt.f32 %v2182_v22 }
 0x87f   : > { %v2828_v23 = vpop.eup %2827 }
 0x880   : > { %v2184_v25 = vmul.f32 %v2828_v23, %v2176_v50 }
 0x882   : > { %v2191_v48 = vmul.f32 %v2501_v24, %v2184_v25 }
 0x884   : > { %v2198_v27 = vadd.f32 %v2502_v26, %v2191_v48 }
 0x886   : > { %2661 = vmatmul.mubr.msk.f32.vlgmr.msra.gmra.mrb[16].mxu1 %vm567_vm0, %v2198_v27 }
 0x959   : > { %v2279_v31 = vpop.f32.mrb[16].mxu1 }
 0x95a   : > { %v2280_v32 = vadd.f32 %v2503_v30, %v2279_v31  ;;  %v2662_v33 = vpop.f32.mrb[17].mxu1 }
 0x95c   : > { %v2283_v34 = vmax.f32 %v2280_v32, 0.0 }
 0x95e   : > { %2696 = vmatmul.mubr.f32.vlgmr.msra.gmra.mrb[8].mxu0 %v2283_v34 }
 0xa31   : > { %v2373_v36 = vpop.f32.mrb[8].mxu0 }
 0xa32   : > { %v2374_v37 = vadd.f32 %v2505_v35, %v2373_v36  ;;  %v2697_v56 = vpop.f32.mrb[9].mxu0 }
 0xa34   : > { %v2377_v38 = vadd.f32 %v2374_v37, %v3396_v46 }
 0xa36   : > { %2378 = vst.msk [vmem:[%s563_s19] sm:$0xff] %vm567_vm0, %v2377_v38 }
 0xa37   : > { %2872 = shalt.err (!%p2869_p4)
}
 0xa38   : > { %s2873_s24 = scalar_lea.hbm %s3490_s2, 128  ;;  %s2877_s18 = scalar_lea.hbm %s3587_s21, 256 }
 0xa39   : > { %p2874_p5 = scmp.ne.s32.totalorder %s3490_s2, %s2873_s24  ;;  %p2878_p0 = scmp.lt.u32.totalorder %s3490_s2, %s3587_s21 }
 0xa3a   : > { %p2879_p1 = scmp.lt.u32.totalorder %s2877_s18, %s2873_s24  ;;  %p2881_p6 = scmp.lt.u32.totalorder %s2873_s24, %s3490_s2 }
 0xa3b   : > { %p2875_p8 = pnand %p2874_p5, %p3588_p11 }
 0xa3c   : > { %p2880_p3 = por %p2879_p1, %p2878_p0 }
 0xa3d   : > { %p2876_p9 = pneg %p2875_p8 }
 0xa3e   : > { %p2882_p12 = por %p2881_p6, %p2880_p3 }
 0xa40   : > { %p2883_p13 = pnand %p2882_p12, %p2876_p9 }
 0xa42   : > { %2886 = shalt.err (!%p2883_p13)
}
 0xa43   : > { %2754 = dma.vmem_to_hbm [thread:$0]  (%p3588_p11), %s3492_s1, 128, %s3490_s2, %s2380_s28  }
 0xa44 PF: > { %s3589_s16 = sld [smem:[#allocation8_spill]]  ;;  %p3590_p7 = scmp.ne.s32.totalorder %s3575_s22, 0 }
 0xa45   : > { %p3591_p10 = scmp.ge.s32.totalorder %s2925_s27, 2 }
 0xa47   : > { %p2761_p2 = pnand %p3591_p10, %p3590_p7 }
 0xa4a   : > { %s2405_s30 = sand.u32 1, %s3589_s16  }
 0xa4b   : > { %s2406_s23 = scalar_lea.sflag [#allocation4], %s2405_s30 }
 0xa4c   : > { %2908 = dma.done.wait (!%p2761_p2), %s2406_s23, 128  }
 0xa4d   : > { %2910 = vsyncadd (!%p2761_p2), %s2406_s23, 4294967168  ;;  %s3592_s27 = sld [smem:[#allocation9_spill]]  ;;  %s3593_s0 = sld [smem:[#allocation10_spill]] }
 0xa4e   : > { %s3594_s24 = smov %s2917_s25  ;;  %s3595_s25 = smov %s2921_s26 }
 0xa53   : > { %p30_p4 = scmp.ge.s32.totalorder %s3592_s27, 4   ;;  %s3596_s26 = smov %s3593_s0 }
 0xa55   :  { %32 = sbr.rel (!%p30_p4) target bundleno = 12 (0xc), region = 133 }
 0xa5c   :  { %2411 = vsyncpa [#allocation3], 1 }
 0xa5d   :  { %2413 = vsyncpa [#allocation3 + $0x1], 1 }
 0xa5e   :  { %2414 = vsyncpa [#allocation4], 1 }
 0xa5f   :  { %2416 = vsyncpa [#allocation4 + $0x1], 1 }

</bundles_post_ra>
